<compile_context>
chip_gen: v7x
topology: tpu7x:2x2x1
jax: 0.10.0
libtpu: 0.0.40
codegen_flags: <defaults>
</compile_context>

<pallas_src>
import functools

import jax
import jax.numpy as jnp
from jax.experimental import pallas as pl
from jax.experimental.pallas import tpu as pltpu

HIDDEN_SIZE = 2
INPUT_SIZE = 201
NUM_CLASSES = 2
NUM_LAYERS = 1   # only 1 layer is supported (matches the module's config)

# Grid policy (v7x has 2 TCs; v5e/v6e have 1, where a grid is pure overhead).
BATCH_GRID_MIN = 1024        # below this batch size: gridless, fully VMEM resident
DEFAULT_BATCH_BLOCK = 1024   # ~6.6 MB x f32 block @ T=8, I=201; 2x-buffered + scratch
                             # stays well under v7x's 32 MiB default scoped VMEM


def lstm1_kernel(x_ref, wih_ref, whh_ref, b_ref,
                 w1_ref, b1_ref, w2_ref, b2_ref, out_ref, *, batch, seq_len):
    """Full LSTM1 forward for one batch block.

    x_ref  : (T*Bb, I)  f32  time-major flattening (row = t*Bb + b)
    wih_ref: (I, 4H)    f32  transposed weight_ih_l0, i/f/o columns pre-scaled by 0.5
    whh_ref: (H, 4H)    f32  transposed weight_hh_l0, i/f/o columns pre-scaled by 0.5
    b_ref  : (1, 4H)    f32  bias_ih + bias_hh,       i/f/o columns pre-scaled by 0.5
    w1_ref : (H, 128)   f32  transposed fc_1.weight
    b1_ref : (1, 128)   f32
    w2_ref : (128, C)   f32  transposed fc.weight
    b2_ref : (1, C)     f32
    out_ref: (Bb, C)    f32  softmax probabilities
    """
    Bb, T = batch, seq_len
    H = whh_ref.shape[0]
    G = 4 * H

    # ---- input projection: ONE MXU matmul, off the recurrent critical path ----
    # Bias folded in so the loop has no "+ b".
    # TODO(synk): optionally cast x/wih to bf16 (f32 accum) and/or pad I=201->256
    # host-side to cut MXU passes; skipped here to keep the 1e-3 reference match.
    gates_x = (jnp.dot(x_ref[...], wih_ref[...],
                       preferred_element_type=jnp.float32)
               + b_ref[...])                               # (T*Bb, 4H), time-major

    # Recurrent weight rows, hoisted.  With H = 2 the h @ W_hh product is just
    # H broadcast multiply-adds on the VPU (no MXU push/drain on the chain).
    whh = whh_ref[...]                                     # (H, 4H)
    whh_rows = [whh[k:k + 1, :] for k in range(H)]         # each (1, 4H)

    # Lane mask: tanh lanes are the g-gate columns [2H, 3H).
    lane = jax.lax.broadcasted_iota(jnp.int32, (Bb, G), 1)
    tanh_lanes = (lane >= 2 * H) & (lane < 3 * H)

    h = jnp.zeros((Bb, H), jnp.float32)
    c = jnp.zeros((Bb, H), jnp.float32)

    # T is small & static -> fully unrolled recurrence (LLO scheduler visibility).
    # TODO(synk): if the bundle shows the h[:,k:k+1] lane-broadcasts / gate
    # slices binding on the XLU, restructure with pltpu.roll + lane-interleaved
    # whh; at these shapes they are expected to hide under the tanh latency.
    for t in range(T):
        gates = gates_x[t * Bb:(t + 1) * Bb, :]            # contiguous row slice
        for k in range(H):                                 # VPU recurrence
            gates = gates + h[:, k:k + 1] * whh_rows[k]
        # Single EUP pass: i/f/o lanes hold x/2 (weights pre-scaled), so
        # sigmoid(x) = 0.5*tanh(x/2) + 0.5; g lanes hold x -> tanh(x).
        th = jnp.tanh(gates)
        act = jnp.where(tanh_lanes, th, 0.5 * th + 0.5)
        i_g = act[:, 0 * H:1 * H]
        f_g = act[:, 1 * H:2 * H]
        g_g = act[:, 2 * H:3 * H]
        o_g = act[:, 3 * H:4 * H]
        c = f_g * c + i_g * g_g
        h = o_g * jnp.tanh(c)

    # hn.view(-1, H) == (Bb, H); relu; fc_1 (K=H=2 -> VPU FMAs); relu; fc (MXU).
    rh = jnp.maximum(h, 0.0)
    w1 = w1_ref[...]                                       # (H, 128)
    hid = b1_ref[...]                                      # (1, 128) -> broadcasts
    for k in range(H):
        hid = hid + rh[:, k:k + 1] * w1[k:k + 1, :]        # (Bb,1)*(1,128)
    hid = jnp.maximum(hid, 0.0)
    logits = (jnp.dot(hid, w2_ref[...], preferred_element_type=jnp.float32)
              + b2_ref[...])                               # (Bb, C)

    # softmax over the class axis (F.softmax legacy default dim=1 for 2-D).
    logits = logits - jnp.max(logits, axis=1, keepdims=True)
    e = jnp.exp(logits)
    # TODO(synk): at very large B a lane-dense (Bb, 128)-padded store would
    # avoid masked partial vst; negligible at these sizes.
    out_ref[...] = e / jnp.sum(e, axis=1, keepdims=True)


def init_params(key, input_size=INPUT_SIZE, hidden_size=HIDDEN_SIZE,
                num_classes=NUM_CLASSES):
    """Deterministic synthetic parameters with PyTorch-default-style ranges."""
    ks = jax.random.split(key, 8)
    H, I, C = hidden_size, input_size, num_classes

    def u(k, shape, bound):
        return jax.random.uniform(k, shape, jnp.float32, -bound, bound)

    lstm_bound = 1.0 / jnp.sqrt(jnp.float32(H))
    w_ih = u(ks[0], (4 * H, I), lstm_bound)       # PyTorch weight_ih_l0
    w_hh = u(ks[1], (4 * H, H), lstm_bound)       # PyTorch weight_hh_l0
    b_ih = u(ks[2], (4 * H,), lstm_bound)
    b_hh = u(ks[3], (4 * H,), lstm_bound)

    fc1_bound = 1.0 / jnp.sqrt(jnp.float32(H))
    w1 = u(ks[4], (128, H), fc1_bound)            # fc_1.weight
    b1 = u(ks[5], (128,), fc1_bound)

    fc_bound = 1.0 / jnp.sqrt(jnp.float32(128))
    w2 = u(ks[6], (C, 128), fc_bound)             # fc.weight
    b2 = u(ks[7], (C,), fc_bound)

    return {
        "wih_t": w_ih.T,                          # (I, 4H)
        "whh_t": w_hh.T,                          # (H, 4H)
        "b_lstm": (b_ih + b_hh)[None, :],         # (1, 4H)
        "w1_t": w1.T,                             # (H, 128)
        "b1": b1[None, :],                        # (1, 128)
        "w2_t": w2.T,                             # (128, C)
        "b2": b2[None, :],                        # (1, C)
    }


def fold_gate_scale(params):
    """Pre-scale the i/f/o gate columns by 0.5 (exact fp scale) so the kernel
    needs a single tanh per step: sigmoid(x) = 0.5*tanh(x/2) + 0.5."""
    H = params["whh_t"].shape[0]
    scale = jnp.array([0.5] * (2 * H) + [1.0] * H + [0.5] * H, jnp.float32)  # [i,f,g,o]
    kp = dict(params)
    kp["wih_t"] = params["wih_t"] * scale[None, :]
    kp["whh_t"] = params["whh_t"] * scale[None, :]
    kp["b_lstm"] = params["b_lstm"] * scale[None, :]
    return kp


@functools.partial(jax.jit, static_argnames=("batch_block",))
def lstm1_forward(x, kparams, batch_block=None):
    """x: (B, T, I) float32, kparams = fold_gate_scale(params) -> (B, C) probs."""
    B, T, I = x.shape
    C = kparams["w2_t"].shape[1]
    x = x.astype(jnp.float32)

    # Grid policy: gridless below BATCH_GRID_MIN (single TC on v5e/v6e; grid
    # steps cost ~0.35 us each); batch-parallel grid for large B (v7x 2nd TC).
    if batch_block is None:
        batch_block = DEFAULT_BATCH_BLOCK if B >= BATCH_GRID_MIN else B
    batch_block = max(1, min(batch_block, B))
    nb = (B + batch_block - 1) // batch_block
    Bp = nb * batch_block
    if Bp != B:
        x = jnp.pad(x, ((0, Bp - B), (0, 0), (0, 0)))

    # Time-major, block-contiguous flattening (done by XLA, off the kernel's
    # critical path): rows of block i are its sequences in (t, b) order.
    x_flat = (x.reshape(nb, batch_block, T, I)
               .transpose(0, 2, 1, 3)
               .reshape(nb * T * batch_block, I))

    kernel = functools.partial(lstm1_kernel, batch=batch_block, seq_len=T)
    args = (x_flat,
            kparams["wih_t"], kparams["whh_t"], kparams["b_lstm"],
            kparams["w1_t"], kparams["b1"], kparams["w2_t"], kparams["b2"])

    if nb == 1:
        # Fully VMEM-resident, gridless: working set is a few tens of KB at
        # small B, far below even v5e's 16 MiB default scoped VMEM.
        vmem = pl.BlockSpec(memory_space=pltpu.MemorySpace.VMEM)
        out = pl.pallas_call(
            kernel,
            out_shape=jax.ShapeDtypeStruct((Bp, C), jnp.float32),
            in_specs=[vmem] * 8,
            out_specs=vmem,
        )(*args)
    else:
        def full_block(a):
            # Weights stay untiled / fully resident across the grid.
            return pl.BlockSpec(a.shape, lambda *_: (0,) * a.ndim)

        out = pl.pallas_call(
            kernel,
            out_shape=jax.ShapeDtypeStruct((Bp, C), jnp.float32),
            grid=(nb,),
            in_specs=[pl.BlockSpec((T * batch_block, I), lambda i: (i, 0)),
                      full_block(kparams["wih_t"]),
                      full_block(kparams["whh_t"]),
                      full_block(kparams["b_lstm"]),
                      full_block(kparams["w1_t"]),
                      full_block(kparams["b1"]),
                      full_block(kparams["w2_t"]),
                      full_block(kparams["b2"])],
            out_specs=pl.BlockSpec((batch_block, C), lambda i: (i, 0)),
            compiler_params=pltpu.CompilerParams(
                dimension_semantics=("parallel",)),
        )(*args)

    return out[:B]


def lstm1_reference(x, params):
    """Pure-JAX reference of the same forward pass (unscaled params)."""
    B, T, I = x.shape
    H = params["whh_t"].shape[0]

    def step(carry, x_t):
        h, c = carry
        gates = x_t @ params["wih_t"] + h @ params["whh_t"] + params["b_lstm"]
        i = jax.nn.sigmoid(gates[:, 0 * H:1 * H])
        f = jax.nn.sigmoid(gates[:, 1 * H:2 * H])
        g = jnp.tanh(gates[:, 2 * H:3 * H])
        o = jax.nn.sigmoid(gates[:, 3 * H:4 * H])
        c = f * c + i * g
        h = o * jnp.tanh(c)
        return (h, c), None

    h0 = jnp.zeros((B, H), jnp.float32)
    c0 = jnp.zeros((B, H), jnp.float32)
    (h, _), _ = jax.lax.scan(step, (h0, c0), jnp.transpose(x, (1, 0, 2)))
    out = jnp.maximum(h, 0.0)
    out = out @ params["w1_t"] + params["b1"]
    out = jnp.maximum(out, 0.0)
    out = out @ params["w2_t"] + params["b2"]
    return jax.nn.softmax(out, axis=1)


if __name__ == "__main__":
    key = jax.random.PRNGKey(0)
    k_param, k_x1, k_x2 = jax.random.split(key, 3)

    params = init_params(k_param)
    kparams = fold_gate_scale(params)      # kernel-ready (i/f/o cols pre-scaled)

    # --- small batch: gridless, fully VMEM-resident path ---
    B, T = 2, 8
    x = jax.random.normal(k_x1, (B, T, INPUT_SIZE), jnp.float32)
    out = jax.block_until_ready(lstm1_forward(x, kparams))
    assert out.shape == (B, NUM_CLASSES)
    assert bool(jnp.all(jnp.isfinite(out)))
    assert bool(jnp.allclose(jnp.sum(out, axis=1), 1.0, atol=1e-5))
    ref = lstm1_reference(x, params)
    assert bool(jnp.allclose(out, ref, atol=1e-3, rtol=1e-3))

    # --- larger batch: exercise the batch-parallel grid path (v7x 2nd TC) ---
    B2 = 256
    x2 = jax.random.normal(k_x2, (B2, T, INPUT_SIZE), jnp.float32)
    out2 = jax.block_until_ready(lstm1_forward(x2, kparams, batch_block=128))
    assert out2.shape == (B2, NUM_CLASSES)
    assert bool(jnp.all(jnp.isfinite(out2)))
    assert bool(jnp.allclose(jnp.sum(out2, axis=1), 1.0, atol=1e-5))
    ref2 = lstm1_reference(x2, params)
    assert bool(jnp.allclose(out2, ref2, atol=1e-3, rtol=1e-3))

    print("KERNEL_OK")
</pallas_src>

<mosaic_0001>
module attributes {stable_mosaic.version = 11 : i64} {
  func.func @lstm1_kernel(%arg0: memref<16x201xf32, #tpu.memory_space<vmem>>, %arg1: memref<201x8xf32, #tpu.memory_space<vmem>>, %arg2: memref<2x8xf32, #tpu.memory_space<vmem>>, %arg3: memref<1x8xf32, #tpu.memory_space<vmem>>, %arg4: memref<2x128xf32, #tpu.memory_space<vmem>>, %arg5: memref<1x128xf32, #tpu.memory_space<vmem>>, %arg6: memref<128x2xf32, #tpu.memory_space<vmem>>, %arg7: memref<1x2xf32, #tpu.memory_space<vmem>>, %arg8: memref<2x2xf32, #tpu.memory_space<vmem>>) attributes {dimension_semantics = [], scalar_prefetch = 0 : i64, scratch_operands = 0 : i64, tpu.core_type = #tpu.core_type<tc>} {
    %c0 = arith.constant 0 : index
    %c0_0 = arith.constant 0 : index
    %0 = vector.load %arg0[%c0, %c0_0] : memref<16x201xf32, #tpu.memory_space<vmem>>, vector<16x201xf32>
    %c0_1 = arith.constant 0 : index
    %c0_2 = arith.constant 0 : index
    %1 = vector.load %arg1[%c0_1, %c0_2] : memref<201x8xf32, #tpu.memory_space<vmem>>, vector<201x8xf32>
    %cst = arith.constant dense<0.000000e+00> : vector<16x8xf32>
    %2 = tpu.matmul %0, %1, %cst {dimension_numbers = #tpu.dot_dimension_numbers<[1], [0], [0], [1], [0, 0, 1, 1], [], []>} : vector<16x201xf32>, vector<201x8xf32>, vector<16x8xf32> -> vector<16x8xf32>
    %c0_3 = arith.constant 0 : index
    %c0_4 = arith.constant 0 : index
    %3 = vector.load %arg3[%c0_3, %c0_4] : memref<1x8xf32, #tpu.memory_space<vmem>>, vector<1x8xf32>
    %4 = vector.broadcast %3 : vector<1x8xf32> to vector<16x8xf32>
    %5 = arith.addf %2, %4 : vector<16x8xf32>
    %c0_5 = arith.constant 0 : index
    %c0_6 = arith.constant 0 : index
    %6 = vector.load %arg2[%c0_5, %c0_6] : memref<2x8xf32, #tpu.memory_space<vmem>>, vector<2x8xf32>
    %7 = vector.extract_strided_slice %6 {offsets = [0, 0], sizes = [1, 8], strides = [1, 1]} : vector<2x8xf32> to vector<1x8xf32>
    %8 = vector.extract_strided_slice %6 {offsets = [1, 0], sizes = [1, 8], strides = [1, 1]} : vector<2x8xf32> to vector<1x8xf32>
    %9 = tpu.iota {dimensions = array<i32: 1>} : vector<2x8xi32>
    %c4_i32 = arith.constant 4 : i32
    %10 = vector.broadcast %c4_i32 : i32 to vector<2x8xi32>
    %11 = arith.cmpi sge, %9, %10 : vector<2x8xi32>
    %c6_i32 = arith.constant 6 : i32
    %12 = vector.broadcast %c6_i32 : i32 to vector<2x8xi32>
    %13 = arith.cmpi slt, %9, %12 : vector<2x8xi32>
    %14 = arith.andi %11, %13 : vector<2x8xi1>
    %cst_7 = arith.constant 0.000000e+00 : f32
    %15 = vector.broadcast %cst_7 : f32 to vector<2x2xf32>
    %cst_8 = arith.constant 0.000000e+00 : f32
    %16 = vector.broadcast %cst_8 : f32 to vector<2x2xf32>
    %17 = vector.extract_strided_slice %5 {offsets = [0, 0], sizes = [2, 8], strides = [1, 1]} : vector<16x8xf32> to vector<2x8xf32>
    %18 = vector.extract_strided_slice %15 {offsets = [0, 0], sizes = [2, 1], strides = [1, 1]} : vector<2x2xf32> to vector<2x1xf32>
    %19 = vector.broadcast %18 : vector<2x1xf32> to vector<2x8xf32>
    %20 = vector.broadcast %7 : vector<1x8xf32> to vector<2x8xf32>
    %21 = arith.mulf %19, %20 : vector<2x8xf32>
    %22 = arith.addf %17, %21 : vector<2x8xf32>
    %23 = vector.extract_strided_slice %15 {offsets = [0, 1], sizes = [2, 1], strides = [1, 1]} : vector<2x2xf32> to vector<2x1xf32>
    %24 = vector.broadcast %23 : vector<2x1xf32> to vector<2x8xf32>
    %25 = vector.broadcast %8 : vector<1x8xf32> to vector<2x8xf32>
    %26 = arith.mulf %24, %25 : vector<2x8xf32>
    %27 = arith.addf %22, %26 : vector<2x8xf32>
    %28 = math.tanh %27 : vector<2x8xf32>
    %cst_9 = arith.constant 5.000000e-01 : f32
    %29 = vector.broadcast %cst_9 : f32 to vector<2x8xf32>
    %30 = arith.mulf %29, %28 : vector<2x8xf32>
    %cst_10 = arith.constant 5.000000e-01 : f32
    %31 = vector.broadcast %cst_10 : f32 to vector<2x8xf32>
    %32 = arith.addf %30, %31 : vector<2x8xf32>
    %33 = arith.select %14, %28, %32 : vector<2x8xi1>, vector<2x8xf32>
    %34 = vector.extract_strided_slice %33 {offsets = [0, 0], sizes = [2, 2], strides = [1, 1]} : vector<2x8xf32> to vector<2x2xf32>
    %35 = vector.extract_strided_slice %33 {offsets = [0, 2], sizes = [2, 2], strides = [1, 1]} : vector<2x8xf32> to vector<2x2xf32>
    %36 = vector.extract_strided_slice %33 {offsets = [0, 4], sizes = [2, 2], strides = [1, 1]} : vector<2x8xf32> to vector<2x2xf32>
    %37 = vector.extract_strided_slice %33 {offsets = [0, 6], sizes = [2, 2], strides = [1, 1]} : vector<2x8xf32> to vector<2x2xf32>
    %38 = arith.mulf %35, %16 : vector<2x2xf32>
    %39 = arith.mulf %34, %36 : vector<2x2xf32>
    %40 = arith.addf %38, %39 : vector<2x2xf32>
    %41 = math.tanh %40 : vector<2x2xf32>
    %42 = arith.mulf %37, %41 : vector<2x2xf32>
    %43 = vector.extract_strided_slice %5 {offsets = [2, 0], sizes = [2, 8], strides = [1, 1]} : vector<16x8xf32> to vector<2x8xf32>
    %44 = vector.extract_strided_slice %42 {offsets = [0, 0], sizes = [2, 1], strides = [1, 1]} : vector<2x2xf32> to vector<2x1xf32>
    %45 = vector.broadcast %44 : vector<2x1xf32> to vector<2x8xf32>
    %46 = vector.broadcast %7 : vector<1x8xf32> to vector<2x8xf32>
    %47 = arith.mulf %45, %46 : vector<2x8xf32>
    %48 = arith.addf %43, %47 : vector<2x8xf32>
    %49 = vector.extract_strided_slice %42 {offsets = [0, 1], sizes = [2, 1], strides = [1, 1]} : vector<2x2xf32> to vector<2x1xf32>
    %50 = vector.broadcast %49 : vector<2x1xf32> to vector<2x8xf32>
    %51 = vector.broadcast %8 : vector<1x8xf32> to vector<2x8xf32>
    %52 = arith.mulf %50, %51 : vector<2x8xf32>
    %53 = arith.addf %48, %52 : vector<2x8xf32>
    %54 = math.tanh %53 : vector<2x8xf32>
    %cst_11 = arith.constant 5.000000e-01 : f32
    %55 = vector.broadcast %cst_11 : f32 to vector<2x8xf32>
    %56 = arith.mulf %55, %54 : vector<2x8xf32>
    %cst_12 = arith.constant 5.000000e-01 : f32
    %57 = vector.broadcast %cst_12 : f32 to vector<2x8xf32>
    %58 = arith.addf %56, %57 : vector<2x8xf32>
    %59 = arith.select %14, %54, %58 : vector<2x8xi1>, vector<2x8xf32>
    %60 = vector.extract_strided_slice %59 {offsets = [0, 0], sizes = [2, 2], strides = [1, 1]} : vector<2x8xf32> to vector<2x2xf32>
    %61 = vector.extract_strided_slice %59 {offsets = [0, 2], sizes = [2, 2], strides = [1, 1]} : vector<2x8xf32> to vector<2x2xf32>
    %62 = vector.extract_strided_slice %59 {offsets = [0, 4], sizes = [2, 2], strides = [1, 1]} : vector<2x8xf32> to vector<2x2xf32>
    %63 = vector.extract_strided_slice %59 {offsets = [0, 6], sizes = [2, 2], strides = [1, 1]} : vector<2x8xf32> to vector<2x2xf32>
    %64 = arith.mulf %61, %40 : vector<2x2xf32>
    %65 = arith.mulf %60, %62 : vector<2x2xf32>
    %66 = arith.addf %64, %65 : vector<2x2xf32>
    %67 = math.tanh %66 : vector<2x2xf32>
    %68 = arith.mulf %63, %67 : vector<2x2xf32>
    %69 = vector.extract_strided_slice %5 {offsets = [4, 0], sizes = [2, 8], strides = [1, 1]} : vector<16x8xf32> to vector<2x8xf32>
    %70 = vector.extract_strided_slice %68 {offsets = [0, 0], sizes = [2, 1], strides = [1, 1]} : vector<2x2xf32> to vector<2x1xf32>
    %71 = vector.broadcast %70 : vector<2x1xf32> to vector<2x8xf32>
    %72 = vector.broadcast %7 : vector<1x8xf32> to vector<2x8xf32>
    %73 = arith.mulf %71, %72 : vector<2x8xf32>
    %74 = arith.addf %69, %73 : vector<2x8xf32>
    %75 = vector.extract_strided_slice %68 {offsets = [0, 1], sizes = [2, 1], strides = [1, 1]} : vector<2x2xf32> to vector<2x1xf32>
    %76 = vector.broadcast %75 : vector<2x1xf32> to vector<2x8xf32>
    %77 = vector.broadcast %8 : vector<1x8xf32> to vector<2x8xf32>
    %78 = arith.mulf %76, %77 : vector<2x8xf32>
    %79 = arith.addf %74, %78 : vector<2x8xf32>
    %80 = math.tanh %79 : vector<2x8xf32>
    %cst_13 = arith.constant 5.000000e-01 : f32
    %81 = vector.broadcast %cst_13 : f32 to vector<2x8xf32>
    %82 = arith.mulf %81, %80 : vector<2x8xf32>
    %cst_14 = arith.constant 5.000000e-01 : f32
    %83 = vector.broadcast %cst_14 : f32 to vector<2x8xf32>
    %84 = arith.addf %82, %83 : vector<2x8xf32>
    %85 = arith.select %14, %80, %84 : vector<2x8xi1>, vector<2x8xf32>
    %86 = vector.extract_strided_slice %85 {offsets = [0, 0], sizes = [2, 2], strides = [1, 1]} : vector<2x8xf32> to vector<2x2xf32>
    %87 = vector.extract_strided_slice %85 {offsets = [0, 2], sizes = [2, 2], strides = [1, 1]} : vector<2x8xf32> to vector<2x2xf32>
    %88 = vector.extract_strided_slice %85 {offsets = [0, 4], sizes = [2, 2], strides = [1, 1]} : vector<2x8xf32> to vector<2x2xf32>
    %89 = vector.extract_strided_slice %85 {offsets = [0, 6], sizes = [2, 2], strides = [1, 1]} : vector<2x8xf32> to vector<2x2xf32>
    %90 = arith.mulf %87, %66 : vector<2x2xf32>
    %91 = arith.mulf %86, %88 : vector<2x2xf32>
    %92 = arith.addf %90, %91 : vector<2x2xf32>
    %93 = math.tanh %92 : vector<2x2xf32>
    %94 = arith.mulf %89, %93 : vector<2x2xf32>
    %95 = vector.extract_strided_slice %5 {offsets = [6, 0], sizes = [2, 8], strides = [1, 1]} : vector<16x8xf32> to vector<2x8xf32>
    %96 = vector.extract_strided_slice %94 {offsets = [0, 0], sizes = [2, 1], strides = [1, 1]} : vector<2x2xf32> to vector<2x1xf32>
    %97 = vector.broadcast %96 : vector<2x1xf32> to vector<2x8xf32>
    %98 = vector.broadcast %7 : vector<1x8xf32> to vector<2x8xf32>
    %99 = arith.mulf %97, %98 : vector<2x8xf32>
    %100 = arith.addf %95, %99 : vector<2x8xf32>
    %101 = vector.extract_strided_slice %94 {offsets = [0, 1], sizes = [2, 1], strides = [1, 1]} : vector<2x2xf32> to vector<2x1xf32>
    %102 = vector.broadcast %101 : vector<2x1xf32> to vector<2x8xf32>
    %103 = vector.broadcast %8 : vector<1x8xf32> to vector<2x8xf32>
    %104 = arith.mulf %102, %103 : vector<2x8xf32>
    %105 = arith.addf %100, %104 : vector<2x8xf32>
    %106 = math.tanh %105 : vector<2x8xf32>
    %cst_15 = arith.constant 5.000000e-01 : f32
    %107 = vector.broadcast %cst_15 : f32 to vector<2x8xf32>
    %108 = arith.mulf %107, %106 : vector<2x8xf32>
    %cst_16 = arith.constant 5.000000e-01 : f32
    %109 = vector.broadcast %cst_16 : f32 to vector<2x8xf32>
    %110 = arith.addf %108, %109 : vector<2x8xf32>
    %111 = arith.select %14, %106, %110 : vector<2x8xi1>, vector<2x8xf32>
    %112 = vector.extract_strided_slice %111 {offsets = [0, 0], sizes = [2, 2], strides = [1, 1]} : vector<2x8xf32> to vector<2x2xf32>
    %113 = vector.extract_strided_slice %111 {offsets = [0, 2], sizes = [2, 2], strides = [1, 1]} : vector<2x8xf32> to vector<2x2xf32>
    %114 = vector.extract_strided_slice %111 {offsets = [0, 4], sizes = [2, 2], strides = [1, 1]} : vector<2x8xf32> to vector<2x2xf32>
    %115 = vector.extract_strided_slice %111 {offsets = [0, 6], sizes = [2, 2], strides = [1, 1]} : vector<2x8xf32> to vector<2x2xf32>
    %116 = arith.mulf %113, %92 : vector<2x2xf32>
    %117 = arith.mulf %112, %114 : vector<2x2xf32>
    %118 = arith.addf %116, %117 : vector<2x2xf32>
    %119 = math.tanh %118 : vector<2x2xf32>
    %120 = arith.mulf %115, %119 : vector<2x2xf32>
    %121 = vector.extract_strided_slice %5 {offsets = [8, 0], sizes = [2, 8], strides = [1, 1]} : vector<16x8xf32> to vector<2x8xf32>
    %122 = vector.extract_strided_slice %120 {offsets = [0, 0], sizes = [2, 1], strides = [1, 1]} : vector<2x2xf32> to vector<2x1xf32>
    %123 = vector.broadcast %122 : vector<2x1xf32> to vector<2x8xf32>
    %124 = vector.broadcast %7 : vector<1x8xf32> to vector<2x8xf32>
    %125 = arith.mulf %123, %124 : vector<2x8xf32>
    %126 = arith.addf %121, %125 : vector<2x8xf32>
    %127 = vector.extract_strided_slice %120 {offsets = [0, 1], sizes = [2, 1], strides = [1, 1]} : vector<2x2xf32> to vector<2x1xf32>
    %128 = vector.broadcast %127 : vector<2x1xf32> to vector<2x8xf32>
    %129 = vector.broadcast %8 : vector<1x8xf32> to vector<2x8xf32>
    %130 = arith.mulf %128, %129 : vector<2x8xf32>
    %131 = arith.addf %126, %130 : vector<2x8xf32>
    %132 = math.tanh %131 : vector<2x8xf32>
    %cst_17 = arith.constant 5.000000e-01 : f32
    %133 = vector.broadcast %cst_17 : f32 to vector<2x8xf32>
    %134 = arith.mulf %133, %132 : vector<2x8xf32>
    %cst_18 = arith.constant 5.000000e-01 : f32
    %135 = vector.broadcast %cst_18 : f32 to vector<2x8xf32>
    %136 = arith.addf %134, %135 : vector<2x8xf32>
    %137 = arith.select %14, %132, %136 : vector<2x8xi1>, vector<2x8xf32>
    %138 = vector.extract_strided_slice %137 {offsets = [0, 0], sizes = [2, 2], strides = [1, 1]} : vector<2x8xf32> to vector<2x2xf32>
    %139 = vector.extract_strided_slice %137 {offsets = [0, 2], sizes = [2, 2], strides = [1, 1]} : vector<2x8xf32> to vector<2x2xf32>
    %140 = vector.extract_strided_slice %137 {offsets = [0, 4], sizes = [2, 2], strides = [1, 1]} : vector<2x8xf32> to vector<2x2xf32>
    %141 = vector.extract_strided_slice %137 {offsets = [0, 6], sizes = [2, 2], strides = [1, 1]} : vector<2x8xf32> to vector<2x2xf32>
    %142 = arith.mulf %139, %118 : vector<2x2xf32>
    %143 = arith.mulf %138, %140 : vector<2x2xf32>
    %144 = arith.addf %142, %143 : vector<2x2xf32>
    %145 = math.tanh %144 : vector<2x2xf32>
    %146 = arith.mulf %141, %145 : vector<2x2xf32>
    %147 = vector.extract_strided_slice %5 {offsets = [10, 0], sizes = [2, 8], strides = [1, 1]} : vector<16x8xf32> to vector<2x8xf32>
    %148 = vector.extract_strided_slice %146 {offsets = [0, 0], sizes = [2, 1], strides = [1, 1]} : vector<2x2xf32> to vector<2x1xf32>
    %149 = vector.broadcast %148 : vector<2x1xf32> to vector<2x8xf32>
    %150 = vector.broadcast %7 : vector<1x8xf32> to vector<2x8xf32>
    %151 = arith.mulf %149, %150 : vector<2x8xf32>
    %152 = arith.addf %147, %151 : vector<2x8xf32>
    %153 = vector.extract_strided_slice %146 {offsets = [0, 1], sizes = [2, 1], strides = [1, 1]} : vector<2x2xf32> to vector<2x1xf32>
    %154 = vector.broadcast %153 : vector<2x1xf32> to vector<2x8xf32>
    %155 = vector.broadcast %8 : vector<1x8xf32> to vector<2x8xf32>
    %156 = arith.mulf %154, %155 : vector<2x8xf32>
    %157 = arith.addf %152, %156 : vector<2x8xf32>
    %158 = math.tanh %157 : vector<2x8xf32>
    %cst_19 = arith.constant 5.000000e-01 : f32
    %159 = vector.broadcast %cst_19 : f32 to vector<2x8xf32>
    %160 = arith.mulf %159, %158 : vector<2x8xf32>
    %cst_20 = arith.constant 5.000000e-01 : f32
    %161 = vector.broadcast %cst_20 : f32 to vector<2x8xf32>
    %162 = arith.addf %160, %161 : vector<2x8xf32>
    %163 = arith.select %14, %158, %162 : vector<2x8xi1>, vector<2x8xf32>
    %164 = vector.extract_strided_slice %163 {offsets = [0, 0], sizes = [2, 2], strides = [1, 1]} : vector<2x8xf32> to vector<2x2xf32>
    %165 = vector.extract_strided_slice %163 {offsets = [0, 2], sizes = [2, 2], strides = [1, 1]} : vector<2x8xf32> to vector<2x2xf32>
    %166 = vector.extract_strided_slice %163 {offsets = [0, 4], sizes = [2, 2], strides = [1, 1]} : vector<2x8xf32> to vector<2x2xf32>
    %167 = vector.extract_strided_slice %163 {offsets = [0, 6], sizes = [2, 2], strides = [1, 1]} : vector<2x8xf32> to vector<2x2xf32>
    %168 = arith.mulf %165, %144 : vector<2x2xf32>
    %169 = arith.mulf %164, %166 : vector<2x2xf32>
    %170 = arith.addf %168, %169 : vector<2x2xf32>
    %171 = math.tanh %170 : vector<2x2xf32>
    %172 = arith.mulf %167, %171 : vector<2x2xf32>
    %173 = vector.extract_strided_slice %5 {offsets = [12, 0], sizes = [2, 8], strides = [1, 1]} : vector<16x8xf32> to vector<2x8xf32>
    %174 = vector.extract_strided_slice %172 {offsets = [0, 0], sizes = [2, 1], strides = [1, 1]} : vector<2x2xf32> to vector<2x1xf32>
    %175 = vector.broadcast %174 : vector<2x1xf32> to vector<2x8xf32>
    %176 = vector.broadcast %7 : vector<1x8xf32> to vector<2x8xf32>
    %177 = arith.mulf %175, %176 : vector<2x8xf32>
    %178 = arith.addf %173, %177 : vector<2x8xf32>
    %179 = vector.extract_strided_slice %172 {offsets = [0, 1], sizes = [2, 1], strides = [1, 1]} : vector<2x2xf32> to vector<2x1xf32>
    %180 = vector.broadcast %179 : vector<2x1xf32> to vector<2x8xf32>
    %181 = vector.broadcast %8 : vector<1x8xf32> to vector<2x8xf32>
    %182 = arith.mulf %180, %181 : vector<2x8xf32>
    %183 = arith.addf %178, %182 : vector<2x8xf32>
    %184 = math.tanh %183 : vector<2x8xf32>
    %cst_21 = arith.constant 5.000000e-01 : f32
    %185 = vector.broadcast %cst_21 : f32 to vector<2x8xf32>
    %186 = arith.mulf %185, %184 : vector<2x8xf32>
    %cst_22 = arith.constant 5.000000e-01 : f32
    %187 = vector.broadcast %cst_22 : f32 to vector<2x8xf32>
    %188 = arith.addf %186, %187 : vector<2x8xf32>
    %189 = arith.select %14, %184, %188 : vector<2x8xi1>, vector<2x8xf32>
    %190 = vector.extract_strided_slice %189 {offsets = [0, 0], sizes = [2, 2], strides = [1, 1]} : vector<2x8xf32> to vector<2x2xf32>
    %191 = vector.extract_strided_slice %189 {offsets = [0, 2], sizes = [2, 2], strides = [1, 1]} : vector<2x8xf32> to vector<2x2xf32>
    %192 = vector.extract_strided_slice %189 {offsets = [0, 4], sizes = [2, 2], strides = [1, 1]} : vector<2x8xf32> to vector<2x2xf32>
    %193 = vector.extract_strided_slice %189 {offsets = [0, 6], sizes = [2, 2], strides = [1, 1]} : vector<2x8xf32> to vector<2x2xf32>
    %194 = arith.mulf %191, %170 : vector<2x2xf32>
    %195 = arith.mulf %190, %192 : vector<2x2xf32>
    %196 = arith.addf %194, %195 : vector<2x2xf32>
    %197 = math.tanh %196 : vector<2x2xf32>
    %198 = arith.mulf %193, %197 : vector<2x2xf32>
    %199 = vector.extract_strided_slice %5 {offsets = [14, 0], sizes = [2, 8], strides = [1, 1]} : vector<16x8xf32> to vector<2x8xf32>
    %200 = vector.extract_strided_slice %198 {offsets = [0, 0], sizes = [2, 1], strides = [1, 1]} : vector<2x2xf32> to vector<2x1xf32>
    %201 = vector.broadcast %200 : vector<2x1xf32> to vector<2x8xf32>
    %202 = vector.broadcast %7 : vector<1x8xf32> to vector<2x8xf32>
    %203 = arith.mulf %201, %202 : vector<2x8xf32>
    %204 = arith.addf %199, %203 : vector<2x8xf32>
    %205 = vector.extract_strided_slice %198 {offsets = [0, 1], sizes = [2, 1], strides = [1, 1]} : vector<2x2xf32> to vector<2x1xf32>
    %206 = vector.broadcast %205 : vector<2x1xf32> to vector<2x8xf32>
    %207 = vector.broadcast %8 : vector<1x8xf32> to vector<2x8xf32>
    %208 = arith.mulf %206, %207 : vector<2x8xf32>
    %209 = arith.addf %204, %208 : vector<2x8xf32>
    %210 = math.tanh %209 : vector<2x8xf32>
    %cst_23 = arith.constant 5.000000e-01 : f32
    %211 = vector.broadcast %cst_23 : f32 to vector<2x8xf32>
    %212 = arith.mulf %211, %210 : vector<2x8xf32>
    %cst_24 = arith.constant 5.000000e-01 : f32
    %213 = vector.broadcast %cst_24 : f32 to vector<2x8xf32>
    %214 = arith.addf %212, %213 : vector<2x8xf32>
    %215 = arith.select %14, %210, %214 : vector<2x8xi1>, vector<2x8xf32>
    %216 = vector.extract_strided_slice %215 {offsets = [0, 0], sizes = [2, 2], strides = [1, 1]} : vector<2x8xf32> to vector<2x2xf32>
    %217 = vector.extract_strided_slice %215 {offsets = [0, 2], sizes = [2, 2], strides = [1, 1]} : vector<2x8xf32> to vector<2x2xf32>
    %218 = vector.extract_strided_slice %215 {offsets = [0, 4], sizes = [2, 2], strides = [1, 1]} : vector<2x8xf32> to vector<2x2xf32>
    %219 = vector.extract_strided_slice %215 {offsets = [0, 6], sizes = [2, 2], strides = [1, 1]} : vector<2x8xf32> to vector<2x2xf32>
    %220 = arith.mulf %217, %196 : vector<2x2xf32>
    %221 = arith.mulf %216, %218 : vector<2x2xf32>
    %222 = arith.addf %220, %221 : vector<2x2xf32>
    %223 = math.tanh %222 : vector<2x2xf32>
    %224 = arith.mulf %219, %223 : vector<2x2xf32>
    %cst_25 = arith.constant 0.000000e+00 : f32
    %225 = vector.broadcast %cst_25 : f32 to vector<2x2xf32>
    %226 = arith.maximumf %224, %225 : vector<2x2xf32>
    %c0_26 = arith.constant 0 : index
    %c0_27 = arith.constant 0 : index
    %227 = vector.load %arg4[%c0_26, %c0_27] : memref<2x128xf32, #tpu.memory_space<vmem>>, vector<2x128xf32>
    %c0_28 = arith.constant 0 : index
    %c0_29 = arith.constant 0 : index
    %228 = vector.load %arg5[%c0_28, %c0_29] : memref<1x128xf32, #tpu.memory_space<vmem>>, vector<1x128xf32>
    %229 = vector.extract_strided_slice %226 {offsets = [0, 0], sizes = [2, 1], strides = [1, 1]} : vector<2x2xf32> to vector<2x1xf32>
    %230 = vector.extract_strided_slice %227 {offsets = [0, 0], sizes = [1, 128], strides = [1, 1]} : vector<2x128xf32> to vector<1x128xf32>
    %231 = vector.broadcast %229 : vector<2x1xf32> to vector<2x128xf32>
    %232 = vector.broadcast %230 : vector<1x128xf32> to vector<2x128xf32>
    %233 = arith.mulf %231, %232 : vector<2x128xf32>
    %234 = vector.broadcast %228 : vector<1x128xf32> to vector<2x128xf32>
    %235 = arith.addf %234, %233 : vector<2x128xf32>
    %236 = vector.extract_strided_slice %226 {offsets = [0, 1], sizes = [2, 1], strides = [1, 1]} : vector<2x2xf32> to vector<2x1xf32>
    %237 = vector.extract_strided_slice %227 {offsets = [1, 0], sizes = [1, 128], strides = [1, 1]} : vector<2x128xf32> to vector<1x128xf32>
    %238 = vector.broadcast %236 : vector<2x1xf32> to vector<2x128xf32>
    %239 = vector.broadcast %237 : vector<1x128xf32> to vector<2x128xf32>
    %240 = arith.mulf %238, %239 : vector<2x128xf32>
    %241 = arith.addf %235, %240 : vector<2x128xf32>
    %cst_30 = arith.constant 0.000000e+00 : f32
    %242 = vector.broadcast %cst_30 : f32 to vector<2x128xf32>
    %243 = arith.maximumf %241, %242 : vector<2x128xf32>
    %c0_31 = arith.constant 0 : index
    %c0_32 = arith.constant 0 : index
    %244 = vector.load %arg6[%c0_31, %c0_32] : memref<128x2xf32, #tpu.memory_space<vmem>>, vector<128x2xf32>
    %cst_33 = arith.constant dense<0.000000e+00> : vector<2x2xf32>
    %245 = tpu.matmul %243, %244, %cst_33 {dimension_numbers = #tpu.dot_dimension_numbers<[1], [0], [0], [1], [0, 0, 1, 1], [], []>} : vector<2x128xf32>, vector<128x2xf32>, vector<2x2xf32> -> vector<2x2xf32>
    %c0_34 = arith.constant 0 : index
    %c0_35 = arith.constant 0 : index
    %246 = vector.load %arg7[%c0_34, %c0_35] : memref<1x2xf32, #tpu.memory_space<vmem>>, vector<1x2xf32>
    %247 = vector.broadcast %246 : vector<1x2xf32> to vector<2x2xf32>
    %248 = arith.addf %245, %247 : vector<2x2xf32>
    %cst_36 = arith.constant dense<0xFF800000> : vector<2xf32>
    %249 = vector.multi_reduction <maximumf>, %248, %cst_36 [1] : vector<2x2xf32> to vector<2xf32>
    %250 = vector.shape_cast %249 : vector<2xf32> to vector<2x1xf32>
    %251 = vector.broadcast %250 : vector<2x1xf32> to vector<2x2xf32>
    %252 = arith.subf %248, %251 : vector<2x2xf32>
    %253 = math.exp %252 : vector<2x2xf32>
    %cst_37 = arith.constant dense<0.000000e+00> : vector<2xf32>
    %254 = vector.multi_reduction <add>, %253, %cst_37 [1] : vector<2x2xf32> to vector<2xf32>
    %255 = vector.shape_cast %254 : vector<2xf32> to vector<2x1xf32>
    %256 = vector.broadcast %255 : vector<2x1xf32> to vector<2x2xf32>
    %257 = arith.divf %253, %256 : vector<2x2xf32>
    %c0_38 = arith.constant 0 : index
    %c0_39 = arith.constant 0 : index
    %258 = vector.load %arg8[%c0_38, %c0_39] : memref<2x2xf32, #tpu.memory_space<vmem>>, vector<2x2xf32>
    tpu.vector_store %arg8[%c0_38, %c0_39], %257 {strides = array<i32>} : memref<2x2xf32, #tpu.memory_space<vmem>>, vector<2x2xf32>,
    return
  }
}

</mosaic_0001>

<bundles_post_ra>
// kernel: lstm1_forward.1
= control target key start
LH: loop header
LB: loop body
LE: loop exit
PB: predicated region body
PF: predicated region fallthrough
CT: control target
= control target key end

     0   :  { %v848_v3 = vmov 0.0|0.0   ;;  %vm67_vm0 = vcmask 596992   ;;  %s1195_s0 = inlined_call_operand.vmem [shape: f32[16,201], index: 0, kind: input, shape index: {}]   ;;  %s1196_s1 = inlined_call_operand.vmem [shape: f32[201,8], index: 1, kind: input, shape index: {}]   ;;  %s1197_s2 = inlined_call_operand.vmem [shape: f32[2,8], index: 2, kind: input, shape index: {}]   ;;  %s1198_s3 = inlined_call_operand.vmem [shape: f32[1,8], index: 3, kind: input, shape index: {}]   ;;  %s1199_s4 = inlined_call_operand.vmem [shape: f32[2,128], index: 4, kind: input, shape index: {}]   ;;  %s1200_s5 = inlined_call_operand.vmem [shape: f32[1,128], index: 5, kind: input, shape index: {}]   ;;  %s1201_s6 = inlined_call_operand.vmem [shape: f32[128,2], index: 6, kind: input, shape index: {}]   ;;  %s1202_s7 = inlined_call_operand.vmem [shape: f32[1,2], index: 7, kind: input, shape index: {}]   ;;  %s1203_s8 = inlined_call_operand.hbm [shape: f32[2,2], index: 8, kind: output, shape index: {}]  }
   0x1   :  { %v34_v0 = vld [vmem:[%s1196_s1] sm:$0xff]  ;;  %v35_v1 = vld [vmem:[%s1196_s1 + $0x8] sm:$0xff]  ;;  %v36_v2 = vld [vmem:[%s1196_s1 + $0x10] sm:$0xff]  ;;  %705 = vmatprep.subr.bf16.mxu0 %v848_v3  ;;  %745 = vmatprep.subr.bf16.mxu1 %v848_v3 }
   0x2   :  { %v706_v4 = vpack.c.bf16 %v35_v1, %v34_v0  ;;  %v37_v5 = vld [vmem:[%s1196_s1 + $0x18] sm:$0xff]  ;;  %v38_v7 = vld [vmem:[%s1196_s1 + $0x20] sm:$0xff]  ;;  %v39_v8 = vld [vmem:[%s1196_s1 + $0x28] sm:$0xff] }
   0x3   :  { %v709_v6 = vpack.c.bf16 %v37_v5, %v36_v2  ;;  %v712_v9 = vpack.c.bf16 %v39_v8, %v38_v7  ;;  %v40_v10 = vld [vmem:[%s1196_s1 + $0x30] sm:$0xff]  ;;  %v41_v11 = vld [vmem:[%s1196_s1 + $0x38] sm:$0xff]  ;;  %v31_v12 = vld [vmem:[%s1195_s0 + $0x8] sm:$0xff] }
   0x4   :  { %707 = vmatpush1.bf16.msra.mxu0 %v706_v4  ;;  %649 = vmatprep.mubr.msk.f32.mxu0 %vm67_vm0, %v31_v12 }
   0x5   :  { %708 = vmatprep.subr.bf16.mxu0 %v848_v3 }
   0x8   :  { %710 = vmatpush1.bf16.msra.mxu0 %v709_v6 }
   0x9   :  { %711 = vmatprep.subr.bf16.mxu0 %v848_v3 }
   0xa   :  { %13 = vsyncpa [#allocation3], 0  ;;  %v715_v13 = vpack.c.bf16 %v41_v11, %v40_v10  ;;  %v42_v14 = vld [vmem:[%s1196_s1 + $0x40] sm:$0xff]  ;;  %v43_v15 = vld [vmem:[%s1196_s1 + $0x48] sm:$0xff]  ;;  %vm74_vm1 = vcmask 1040384   ;;  %vm849_vm2 = vmmov 1   ;;  %v154_v42 = vlaneseq }
   0xb   :  { %v718_v16 = vpack.c.bf16 %v43_v15, %v42_v14  ;;  %v44_v17 = vld [vmem:[%s1196_s1 + $0x50] sm:$0xff]  ;;  %v45_v18 = vld [vmem:[%s1196_s1 + $0x58] sm:$0xff]  ;;  %v46_v20 = vld [vmem:[%s1196_s1 + $0x60] sm:$0xff]  ;;  %v852_v5 = vmov 7   ;;  %v853_v6 = vmov 6   ;;  %s854_s20 = smov 4  }
   0xc   :  { %713 = vmatpush1.bf16.msra.mxu0 %v712_v9  ;;  %v721_v19 = vpack.c.bf16 %v45_v18, %v44_v17  ;;  %v47_v21 = vld [vmem:[%s1196_s1 + $0x68] sm:$0xff]  ;;  %v48_v23 = vld [vmem:[%s1196_s1 + $0x70] sm:$0xff]  ;;  %v49_v24 = vld [vmem:[%s1196_s1 + $0x78] sm:$0xff]  ;;  %v1002_v43 = vshrl.u32 %v154_v42, 7  ;;  %v155_v57 = vand.u32 127, %v154_v42  ;;  %780 = vset.pattern.permute.xlu0 %v852_v5  ;;  %vm855_vm7 = vmmov 0  }
   0xd   :  { %714 = vmatprep.subr.bf16.mxu0 %v848_v3  ;;  %v724_v22 = vpack.c.bf16 %v47_v21, %v46_v20  ;;  %v727_v25 = vpack.c.bf16 %v49_v24, %v48_v23  ;;  %v50_v26 = vld [vmem:[%s1196_s1 + $0x80] sm:$0xff]  ;;  %v51_v27 = vld [vmem:[%s1196_s1 + $0x88] sm:$0xff]  ;;  %v52_v29 = vld [vmem:[%s1196_s1 + $0x90] sm:$0xff]  ;;  %779 = vset.pattern.permute.xlu1 %v853_v6  ;;  %vm620_vm8 = vcmask 9216  }
   0xe   :  { %v730_v28 = vpack.c.bf16 %v51_v27, %v50_v26  ;;  %v53_v30 = vld [vmem:[%s1196_s1 + $0x98] sm:$0xff]  ;;  %v54_v32 = vld [vmem:[%s1196_s1 + $0xa0] sm:$0xff]  ;;  %v55_v33 = vld [vmem:[%s1196_s1 + $0xa8] sm:$0xff]  ;;  %v161_v44 = vsub.s32 0, %v1002_v43  ;;  %v167_v46 = vsub.s32 1, %v1002_v43  ;;  %vm156_vm4 = vcmp.ge.s32.totalorder %v155_v57, 4 }
   0xf   :  { %v733_v31 = vpack.c.bf16 %v53_v30, %v52_v29  ;;  %v736_v34 = vpack.c.bf16 %v55_v33, %v54_v32  ;;  %v56_v35 = vld [vmem:[%s1196_s1 + $0xb0] sm:$0xff]  ;;  %v57_v36 = vld [vmem:[%s1196_s1 + $0xb8] sm:$0xff]  ;;  %v58_v38 = vld [vmem:[%s1196_s1 + $0xc0] sm:$0xff]  ;;  %vm157_vm5 = vcmp.lt.s32.totalorder %v155_v57, 6 }
  0x10   :  { %716 = vmatpush1.bf16.msra.mxu0 %v715_v13  ;;  %v739_v37 = vpack.c.bf16 %v57_v36, %v56_v35  ;;  %v59_v39 = vld [vmem:[%s1196_s1 + $0xc8] sm:$0x1]  ;;  %vm743_vm3 = vmpackc.low %vm74_vm1, %vm849_vm2  ;;  %v30_v41 = vld [vmem:[%s1195_s0] sm:$0xff] }
  0x11   :  { %717 = vmatprep.subr.bf16.mxu0 %v848_v3  ;;  %v742_v40 = vpack.c.bf16 %v59_v39, %v58_v38  ;;  %v153_v45 = vld [vmem:[%s1197_s2] sm:$0x3]  ;;  %vm1028_vm6 = vmand %vm156_vm4, %vm157_vm5  ;;  %s850_s2 = smov 124   ;;  %v525_v60 = vld [vmem:[%s1201_s6 + $0x8] sm:$0xff] }
  0x12   :  { %v1011_v47 = vrot.slane %v153_v45, %v161_v44  ;;  %v1015_v48 = vrot.slane %v153_v45, %v167_v46  ;;  %v1020_v49 = vld [vmem:[%s1198_s3] ss:$0 sm:$0xff]  ;;  %s851_s3 = smov 2  }
  0x14   :  { %719 = vmatpush1.bf16.msra.mxu0 %v718_v16  ;;  %v163_v50 = vmul.f32 0.0, %v1011_v47  ;;  %v169_v53 = vmul.f32 0.0, %v1015_v48 }
  0x15   :  { %720 = vmatprep.subr.bf16.mxu0 %v848_v3 }
  0x18   :  { %722 = vmatpush1.bf16.msra.mxu0 %v721_v19 }
  0x19   :  { %723 = vmatprep.subr.bf16.mxu0 %v848_v3 }
  0x1c   :  { %725 = vmatpush1.bf16.msra.mxu0 %v724_v22 }
  0x1d   :  { %726 = vmatprep.subr.bf16.mxu0 %v848_v3 }
  0x20   :  { %728 = vmatpush1.bf16.msra.mxu0 %v727_v25 }
  0x21   :  { %729 = vmatprep.subr.bf16.mxu0 %v848_v3 }
  0x24   :  { %731 = vmatpush1.bf16.msra.mxu0 %v730_v28 }
  0x25   :  { %732 = vmatprep.subr.bf16.mxu0 %v848_v3 }
  0x28   :  { %734 = vmatpush1.bf16.msra.mxu0 %v733_v31 }
  0x29   :  { %735 = vmatprep.subr.bf16.mxu0 %v848_v3 }
  0x2c   :  { %737 = vmatpush1.bf16.msra.mxu0 %v736_v34 }
  0x2d   :  { %738 = vmatprep.subr.bf16.mxu0 %v848_v3 }
  0x30   :  { %740 = vmatpush1.bf16.msra.mxu0 %v739_v37 }
  0x31   :  { %741 = vmatprep.subr.bf16.mxu0 %v848_v3 }
  0x34   :  { %744 = vmatpush1.bf16.msk.msra.mxu0 %vm743_vm3, %v742_v40 }
  0x37   :  { %143 = vmatmul.mubr.f32.vlgmr.msra.gmra.mrb[0].mxu0 %v30_v41 }
 0x10a   :  { %v144_v51 = vpop.f32.mrb[0].mxu0 }
 0x10b   :  { %v1024_v52 = vadd.f32 %v1020_v49, %v144_v51  ;;  %v146_v54 = vpop.f32.mrb[1].mxu0 }
 0x10d   :  { %v164_v55 = vadd.f32 %v163_v50, %v1024_v52 }
 0x10f   :  { %v170_v56 = vadd.f32 %v169_v53, %v164_v55 }
 0x111   :  { %788 = vtanh.f32 %v170_v56 }
 0x11b   :  { %v789_v58 = vpop.eup %788 }
 0x11c   :  { %v172_v59 = vmul.f32 0.5, %v789_v58 }
 0x11e   :  { %v173_v61 = vadd.f32 0.5, %v172_v59 }
 0x120   :  { %v174_v62 = vsel %vm1028_vm6, %v789_v58, %v173_v61 }
 0x121   :  { %177 = vrot.lane.b32.xlu0 %v174_v62, %s850_s2  ;;  %v175_v1 = vmul.f32 0.0, %v174_v62 }
 0x193   :  { %v178_v63 = vpop.permute.xlu0 %177 }
 0x194   :  { %v180_v0 = vmul.f32 %v178_v63, %v174_v62 }
 0x196   :  { %182 = vrot.lane.b32.xlu0 %v180_v0, %s851_s3 }
 0x208   :  { %v183_v2 = vpop.permute.xlu0 %182 }
 0x209   :  { %v185_v4 = vadd.f32 %v183_v2, %v175_v1 }
 0x20b   :  { %790 = vtanh.f32 %v185_v4  ;;  %v216_v24 = vrot.slane %v185_v4, 6 }
 0x215   :  { %v791_v7 = vpop.eup %790 }
 0x216   :  { %188 = vrot.lane.b32.xlu1 %v791_v7, %s854_s20 }
 0x288   :  { %v189_v8 = vpop.permute.xlu1 %188 }
 0x289   :  { %v191_v9 = vmul.f32 %v189_v8, %v174_v62 }
 0x28b   :  { %203 = vperm.xlu0 %780, %v191_v9   ;;  %194 = vperm.xlu1 %779, %v191_v9  }
 0x30a   :  { %v204_v10 = vpop.permute.xlu0 %203  ;;  %v195_v11 = vpop.permute.xlu1 %194 }
 0x30b   :  { %v206_v12 = vmul.f32 %v204_v10, %v1015_v48  ;;  %v197_v13 = vmul.f32 %v195_v11, %v1011_v47 }
 0x30d   :  { %v199_v14 = vrot.slane %v197_v13, 6  ;;  %v208_v15 = vrot.slane %v206_v12, 6  ;;  %v33_v13 = vld [vmem:[%s1195_s0 + $0x18] sm:$0xff] }
 0x30e   :  { %650 = vmatprep.mubr.msk.f32.mxu0 %vm67_vm0, %v33_v13 }
 0x30f   :  { %v201_v16 = vadd.f32 %v199_v14, %v1024_v52 }
 0x311   :  { %v210_v17 = vadd.f32 %v208_v15, %v201_v16 }
 0x313   :  { %792 = vtanh.f32 %v210_v17 }
 0x31d   :  { %v793_v18 = vpop.eup %792 }
 0x31e   :  { %v212_v19 = vmul.f32 0.5, %v793_v18 }
 0x320   :  { %v213_v20 = vadd.f32 0.5, %v212_v19 }
 0x322   :  { %v214_v21 = vsel %vm1028_vm6, %v793_v18, %v213_v20 }
 0x323   :  { %220 = vrot.lane.b32.xlu1 %v214_v21, %s850_s2  ;;  %v218_v25 = vmul.f32 %v216_v24, %v214_v21 }
 0x395   :  { %v221_v22 = vpop.permute.xlu1 %220 }
 0x396   :  { %v223_v23 = vmul.f32 %v221_v22, %v214_v21 }
 0x398   :  { %225 = vrot.lane.b32.xlu1 %v223_v23, %s851_s3 }
 0x40a   :  { %v226_v26 = vpop.permute.xlu1 %225 }
 0x40b   :  { %v228_v27 = vadd.f32 %v226_v26, %v218_v25 }
 0x40d   :  { %794 = vtanh.f32 %v228_v27  ;;  %v259_v51 = vrot.slane %v228_v27, 6 }
 0x417   :  { %v795_v28 = vpop.eup %794 }
 0x418   :  { %231 = vrot.lane.b32.xlu0 %v795_v28, %s854_s20 }
 0x48a   :  { %v232_v29 = vpop.permute.xlu0 %231 }
 0x48b   :  { %v234_v30 = vmul.f32 %v232_v29, %v214_v21 }
 0x48d   :  { %246 = vperm.xlu0 %780, %v234_v30   ;;  %237 = vperm.xlu1 %779, %v234_v30  }
 0x491   :  { %781 = vset.pattern.permute.xlu0 %v853_v6  ;;  %782 = vset.pattern.permute.xlu1 %v852_v5 }
 0x50c   :  { %v247_v31 = vpop.permute.xlu0 %246  ;;  %v238_v32 = vpop.permute.xlu1 %237 }
 0x50d   :  { %v249_v33 = vmul.f32 %v247_v31, %v1015_v48  ;;  %v240_v34 = vmul.f32 %v238_v32, %v1011_v47 }
 0x50f   :  { %v242_v35 = vrot.slane %v240_v34, 6  ;;  %v251_v36 = vrot.slane %v249_v33, 6 }
 0x511   :  { %v244_v37 = vadd.f32 %v242_v35, %v1024_v52 }
 0x513   :  { %v253_v38 = vadd.f32 %v251_v36, %v244_v37 }
 0x515   :  { %796 = vtanh.f32 %v253_v38 }
 0x51f   :  { %v797_v39 = vpop.eup %796 }
 0x520   :  { %v255_v40 = vmul.f32 0.5, %v797_v39 }
 0x522   :  { %v256_v41 = vadd.f32 0.5, %v255_v40 }
 0x524   :  { %v257_v42 = vsel %vm1028_vm6, %v797_v39, %v256_v41 }
 0x525   :  { %263 = vrot.lane.b32.xlu1 %v257_v42, %s850_s2  ;;  %v261_v53 = vmul.f32 %v259_v51, %v257_v42 }
 0x597   :  { %v264_v45 = vpop.permute.xlu1 %263 }
 0x598   :  { %v266_v50 = vmul.f32 %v264_v45, %v257_v42 }
 0x59a   :  { %268 = vrot.lane.b32.xlu0 %v266_v50, %s851_s3 }
 0x60c   :  { %v269_v54 = vpop.permute.xlu0 %268 }
 0x60d   :  { %v271_v55 = vadd.f32 %v269_v54, %v261_v53 }
 0x60f   :  { %798 = vtanh.f32 %v271_v55  ;;  %v302_v14 = vrot.slane %v271_v55, 6 }
 0x619   :  { %v799_v56 = vpop.eup %798 }
 0x61a   :  { %274 = vrot.lane.b32.xlu1 %v799_v56, %s854_s20 }
 0x68c   :  { %v275_v57 = vpop.permute.xlu1 %274 }
 0x68d   :  { %v277_v58 = vmul.f32 %v275_v57, %v257_v42 }
 0x68f   :  { %289 = vperm.xlu1 %782, %v277_v58   ;;  %280 = vperm.xlu0 %781, %v277_v58  }
 0x70e   :  { %v290_v59 = vpop.permute.xlu1 %289  ;;  %v281_v61 = vpop.permute.xlu0 %280 }
 0x70f   :  { %v292_v62 = vmul.f32 %v290_v59, %v1015_v48  ;;  %v283_v63 = vmul.f32 %v281_v61, %v1011_v47 }
 0x711   :  { %v285_v0 = vrot.slane %v283_v63, 6  ;;  %v294_v1 = vrot.slane %v292_v62, 6 }
 0x713   :  { %v287_v2 = vadd.f32 %v285_v0, %v1024_v52  ;;  %v32_v52 = vld [vmem:[%s1195_s0 + $0x10] sm:$0xff] }
 0x714   :  { %148 = vmatmul.mubr.f32.gmra.mrb[2].mxu0 %v32_v52 }
 0x715   :  { %v296_v4 = vadd.f32 %v294_v1, %v287_v2 }
 0x717   :  { %800 = vtanh.f32 %v296_v4 }
 0x721   :  { %v801_v7 = vpop.eup %800 }
 0x722   :  { %v298_v8 = vmul.f32 0.5, %v801_v7 }
 0x724   :  { %v299_v9 = vadd.f32 0.5, %v298_v8 }
 0x726   :  { %v300_v10 = vsel %vm1028_vm6, %v801_v7, %v299_v9 }
 0x727   :  { %306 = vrot.lane.b32.xlu1 %v300_v10, %s850_s2  ;;  %v304_v15 = vmul.f32 %v302_v14, %v300_v10 }
 0x799   :  { %v307_v11 = vpop.permute.xlu1 %306 }
 0x79a   :  { %v309_v12 = vmul.f32 %v307_v11, %v300_v10 }
 0x79c   :  { %311 = vrot.lane.b32.xlu0 %v309_v12, %s851_s3 }
 0x7e7   :  { %v149_v21 = vpop.f32.mrb[2].mxu0 }
 0x7e8   :  { %v151_v22 = vpop.f32.mrb[3].mxu0  ;;  %v1077_v27 = vadd.f32 %v1020_v49, %v149_v21 }
 0x80e   :  { %v312_v16 = vpop.permute.xlu0 %311 }
 0x80f   :  { %v314_v17 = vadd.f32 %v312_v16, %v304_v15 }
 0x811   :  { %802 = vtanh.f32 %v314_v17  ;;  %v345_v49 = vrot.slane %v314_v17, 6 }
 0x81b   :  { %v803_v18 = vpop.eup %802 }
 0x81c   :  { %317 = vrot.lane.b32.xlu1 %v803_v18, %s854_s20 }
 0x88e   :  { %v318_v19 = vpop.permute.xlu1 %317 }
 0x88f   :  { %v320_v20 = vmul.f32 %v318_v19, %v300_v10 }
 0x891   :  { %332 = vperm.xlu1 %782, %v320_v20   ;;  %323 = vperm.xlu0 %781, %v320_v20  }
 0x895   :  { %783 = vset.pattern.permute.xlu1 %v853_v6  ;;  %784 = vset.pattern.permute.xlu0 %v852_v5 }
 0x910   :  { %v333_v23 = vpop.permute.xlu1 %332  ;;  %v324_v24 = vpop.permute.xlu0 %323 }
 0x911   :  { %v335_v25 = vmul.f32 %v333_v23, %v1015_v48  ;;  %v326_v26 = vmul.f32 %v324_v24, %v1011_v47 }
 0x913   :  { %v328_v28 = vrot.slane %v326_v26, 6  ;;  %v337_v29 = vrot.slane %v335_v25, 6 }
 0x915   :  { %v330_v30 = vadd.f32 %v328_v28, %v1077_v27 }
 0x917   :  { %v339_v31 = vadd.f32 %v337_v29, %v330_v30 }
 0x919   :  { %804 = vtanh.f32 %v339_v31 }
 0x923   :  { %v805_v32 = vpop.eup %804 }
 0x924   :  { %v341_v33 = vmul.f32 0.5, %v805_v32 }
 0x926   :  { %v342_v34 = vadd.f32 0.5, %v341_v33 }
 0x928   :  { %v343_v35 = vsel %vm1028_vm6, %v805_v32, %v342_v34 }
 0x929   :  { %349 = vrot.lane.b32.xlu0 %v343_v35, %s850_s2  ;;  %v347_v38 = vmul.f32 %v345_v49, %v343_v35 }
 0x99b   :  { %v350_v36 = vpop.permute.xlu0 %349 }
 0x99c   :  { %v352_v37 = vmul.f32 %v350_v36, %v343_v35 }
 0x99e   :  { %354 = vrot.lane.b32.xlu1 %v352_v37, %s851_s3 }
 0xa10   :  { %v355_v39 = vpop.permute.xlu1 %354 }
 0xa11   :  { %v357_v40 = vadd.f32 %v355_v39, %v347_v38 }
 0xa13   :  { %806 = vtanh.f32 %v357_v40  ;;  %v388_v2 = vrot.slane %v357_v40, 6 }
 0xa1d   :  { %v807_v41 = vpop.eup %806 }
 0xa1e   :  { %360 = vrot.lane.b32.xlu0 %v807_v41, %s854_s20 }
 0xa90   :  { %v361_v42 = vpop.permute.xlu0 %360 }
 0xa91   :  { %v363_v45 = vmul.f32 %v361_v42, %v343_v35 }
 0xa93   :  { %375 = vperm.xlu0 %784, %v363_v45   ;;  %366 = vperm.xlu1 %783, %v363_v45  }
 0xb12   :  { %v376_v50 = vpop.permute.xlu0 %375  ;;  %v367_v51 = vpop.permute.xlu1 %366 }
 0xb13   :  { %v378_v53 = vmul.f32 %v376_v50, %v1015_v48  ;;  %v369_v54 = vmul.f32 %v367_v51, %v1011_v47 }
 0xb15   :  { %v371_v55 = vrot.slane %v369_v54, 6  ;;  %v380_v56 = vrot.slane %v378_v53, 6  ;;  %v526_v54 = vld [vmem:[%s1201_s6 + $0x10] sm:$0xff] }
 0xb17   :  { %v373_v57 = vadd.f32 %v371_v55, %v1077_v27 }
 0xb19   :  { %v382_v58 = vadd.f32 %v380_v56, %v373_v57  ;;  %v527_v56 = vld [vmem:[%s1201_s6 + $0x18] sm:$0xff] }
 0xb1a   :  { %v749_v57 = vpack.c.bf16 %v527_v56, %v526_v54 }
 0xb1b   :  { %808 = vtanh.f32 %v382_v58  ;;  %v528_v58 = vld [vmem:[%s1201_s6 + $0x20] sm:$0xff] }
 0xb25   :  { %v809_v59 = vpop.eup %808 }
 0xb26   :  { %v384_v61 = vmul.f32 0.5, %v809_v59 }
 0xb28   :  { %v385_v62 = vadd.f32 0.5, %v384_v61 }
 0xb2a   :  { %v386_v63 = vsel %vm1028_vm6, %v809_v59, %v385_v62  ;;  %v529_v59 = vld [vmem:[%s1201_s6 + $0x28] sm:$0xff] }
 0xb2b   :  { %392 = vrot.lane.b32.xlu1 %v386_v63, %s850_s2  ;;  %v390_v4 = vmul.f32 %v388_v2, %v386_v63  ;;  %v752_v61 = vpack.c.bf16 %v529_v59, %v528_v58  ;;  %v532_v2 = vld [vmem:[%s1201_s6 + $0x40] sm:$0xff] }
 0xb9d   :  { %v393_v0 = vpop.permute.xlu1 %392 }
 0xb9e   :  { %v395_v1 = vmul.f32 %v393_v0, %v386_v63  ;;  %v531_v0 = vld [vmem:[%s1201_s6 + $0x38] sm:$0xff] }
 0xba0   :  { %397 = vrot.lane.b32.xlu1 %v395_v1, %s851_s3 }
 0xc12   :  { %v398_v7 = vpop.permute.xlu1 %397 }
 0xc13   :  { %v400_v8 = vadd.f32 %v398_v7, %v390_v4  ;;  %v533_v4 = vld [vmem:[%s1201_s6 + $0x48] sm:$0xff] }
 0xc14   :  { %v758_v7 = vpack.c.bf16 %v533_v4, %v532_v2 }
 0xc15   :  { %810 = vtanh.f32 %v400_v8  ;;  %v431_v24 = vrot.slane %v400_v8, 6  ;;  %v534_v8 = vld [vmem:[%s1201_s6 + $0x50] sm:$0xff] }
 0xc1f   :  { %v811_v9 = vpop.eup %810 }
 0xc20   :  { %403 = vrot.lane.b32.xlu0 %v811_v9, %s854_s20  ;;  %v535_v9 = vld [vmem:[%s1201_s6 + $0x58] sm:$0xff] }
 0xc92   :  { %v404_v10 = vpop.permute.xlu0 %403 }
 0xc93   :  { %v406_v11 = vmul.f32 %v404_v10, %v386_v63  ;;  %v530_v63 = vld [vmem:[%s1201_s6 + $0x30] sm:$0xff]  ;;  %v761_v10 = vpack.c.bf16 %v535_v9, %v534_v8 }
 0xc94   :  { %v755_v1 = vpack.c.bf16 %v531_v0, %v530_v63 }
 0xc95   :  { %418 = vperm.xlu0 %784, %v406_v11   ;;  %409 = vperm.xlu1 %783, %v406_v11  }
 0xc99   :  { %785 = vset.pattern.permute.xlu0 %v853_v6  ;;  %786 = vset.pattern.permute.xlu1 %v852_v5 }
 0xd14   :  { %v419_v12 = vpop.permute.xlu0 %418  ;;  %v410_v13 = vpop.permute.xlu1 %409 }
 0xd15   :  { %v421_v52 = vmul.f32 %v419_v12, %v1015_v48  ;;  %v412_v14 = vmul.f32 %v410_v13, %v1011_v47 }
 0xd17   :  { %v414_v15 = vrot.slane %v412_v14, 6  ;;  %v423_v16 = vrot.slane %v421_v52, 6  ;;  %v536_v52 = vld [vmem:[%s1201_s6 + $0x60] sm:$0xff]  ;;  %v537_v14 = vld [vmem:[%s1201_s6 + $0x68] sm:$0xff] }
 0xd19   :  { %v416_v17 = vadd.f32 %v414_v15, %v1077_v27  ;;  %v764_v15 = vpack.c.bf16 %v537_v14, %v536_v52 }
 0xd1b   :  { %v425_v18 = vadd.f32 %v423_v16, %v416_v17  ;;  %v538_v16 = vld [vmem:[%s1201_s6 + $0x70] sm:$0xff]  ;;  %v539_v17 = vld [vmem:[%s1201_s6 + $0x78] sm:$0xff] }
 0xd1d   :  { %812 = vtanh.f32 %v425_v18  ;;  %v767_v18 = vpack.c.bf16 %v539_v17, %v538_v16 }
 0xd27   :  { %v813_v19 = vpop.eup %812 }
 0xd28   :  { %v427_v20 = vmul.f32 0.5, %v813_v19 }
 0xd2a   :  { %v428_v21 = vadd.f32 0.5, %v427_v20  ;;  %v494_v20 = vld [vmem:[%s1199_s4] sm:$0x3] }
 0xd2c   :  { %v429_v6 = vsel %vm1028_vm6, %v813_v19, %v428_v21  ;;  %v856_v19 = vmov 0.0   ;;  %v520_v21 = vrot.slane %v494_v20, %v167_v46 }
 0xd2d   :  { %435 = vrot.lane.b32.xlu1 %v429_v6, %s850_s2  ;;  %v433_v25 = vmul.f32 %v431_v24, %v429_v6  ;;  %702 = vmatprep.mubr.msk.f32.mxu1 %vm855_vm7, %v856_v19 }
 0xd9f   :  { %v436_v22 = vpop.permute.xlu1 %435 }
 0xda0   :  { %v438_v23 = vmul.f32 %v436_v22, %v429_v6 }
 0xda2   :  { %440 = vrot.lane.b32.xlu0 %v438_v23, %s851_s3 }
 0xe14   :  { %v441_v26 = vpop.permute.xlu0 %440 }
 0xe15   :  { %v443_v28 = vadd.f32 %v441_v26, %v433_v25 }
 0xe17   :  { %814 = vtanh.f32 %v443_v28 }
 0xe21   :  { %v815_v29 = vpop.eup %814 }
 0xe22   :  { %446 = vrot.lane.b32.xlu1 %v815_v29, %s854_s20 }
 0xe94   :  { %v447_v30 = vpop.permute.xlu1 %446 }
 0xe95   :  { %v449_v31 = vmul.f32 %v447_v30, %v429_v6 }
 0xe97   :  { %461 = vperm.xlu1 %786, %v449_v31   ;;  %452 = vperm.xlu0 %785, %v449_v31  }
 0xf16   :  { %v462_v32 = vpop.permute.xlu1 %461  ;;  %v453_v33 = vpop.permute.xlu0 %452 }
 0xf17   :  { %v464_v34 = vmul.f32 %v462_v32, %v1015_v48  ;;  %v455_v35 = vmul.f32 %v453_v33, %v1011_v47  ;;  %v474_v48 = vrot.slane %v443_v28, 6 }
 0xf19   :  { %v457_v36 = vrot.slane %v455_v35, 6  ;;  %v466_v37 = vrot.slane %v464_v34, 6 }
 0xf1b   :  { %v459_v49 = vadd.f32 %v457_v36, %v1077_v27  ;;  %v524_v27 = vld [vmem:[%s1201_s6] sm:$0xff] }
 0xf1c   :  { %v746_v55 = vpack.c.bf16 %v525_v60, %v524_v27 }
 0xf1d   :  { %v468_v38 = vadd.f32 %v466_v37, %v459_v49 }
 0xf1e   :  { %747 = vmatpush3.bf16.msra.mxu1 %v746_v55 }
 0xf1f   :  { %816 = vtanh.f32 %v468_v38  ;;  %748 = vmatprep.subr.bf16.mxu1 %v848_v3 }
 0xf22   :  { %750 = vmatpush3.bf16.msra.mxu1 %v749_v57 }
 0xf23   :  { %751 = vmatprep.subr.bf16.mxu1 %v848_v3 }
 0xf26   :  { %753 = vmatpush3.bf16.msra.mxu1 %v752_v61 }
 0xf27   :  { %754 = vmatprep.subr.bf16.mxu1 %v848_v3 }
 0xf29   :  { %v817_v39 = vpop.eup %816 }
 0xf2a   :  { %v470_v40 = vmul.f32 0.5, %v817_v39  ;;  %756 = vmatpush3.bf16.msra.mxu1 %v755_v1 }
 0xf2b   :  { %757 = vmatprep.subr.bf16.mxu1 %v848_v3 }
 0xf2c   :  { %v471_v41 = vadd.f32 0.5, %v470_v40 }
 0xf2e   :  { %v472_v42 = vsel %vm1028_vm6, %v817_v39, %v471_v41  ;;  %759 = vmatpush3.bf16.msra.mxu1 %v758_v7 }
 0xf2f   :  { %478 = vrot.lane.b32.xlu1 %v472_v42, %s850_s2  ;;  %v476_v47 = vmul.f32 %v474_v48, %v472_v42  ;;  %760 = vmatprep.subr.bf16.mxu1 %v848_v3 }
 0xf32   :  { %762 = vmatpush3.bf16.msra.mxu1 %v761_v10 }
 0xf33   :  { %763 = vmatprep.subr.bf16.mxu1 %v848_v3 }
 0xf36   :  { %765 = vmatpush3.bf16.msra.mxu1 %v764_v15 }
 0xf37   :  { %766 = vmatprep.subr.bf16.mxu1 %v848_v3  ;;  %v504_v3 = vrot.slane %v494_v20, %v161_v44  ;;  %v652_v44 = vld [vmem:[%s1202_s7] ss:$0 sm:$0xff] }
 0xf3a   :  { %768 = vmatpush3.bf16.msra.mxu1 %v767_v18 }
 0xfa1   :  { %v479_v45 = vpop.permute.xlu1 %478 }
 0xfa2   :  { %v481_v50 = vmul.f32 %v479_v45, %v472_v42 }
 0xfa4   :  { %483 = vrot.lane.b32.xlu0 %v481_v50, %s851_s3 }
0x1016   :  { %v484_v51 = vpop.permute.xlu0 %483 }
0x1017   :  { %v486_v53 = vadd.f32 %v484_v51, %v476_v47 }
0x1019   :  { %818 = vtanh.f32 %v486_v53 }
0x1023   :  { %v819_v62 = vpop.eup %818 }
0x1024   :  { %489 = vrot.lane.b32.xlu1 %v819_v62, %s854_s20 }
0x1096   :  { %v490_v11 = vpop.permute.xlu1 %489 }
0x1097   :  { %v492_v12 = vmul.f32 %v490_v11, %v472_v42 }
0x1099   :  { %v493_v13 = vmax.f32 %v492_v12, 0.0 }
0x109b   :  { %514 = vperm.xlu1 %786, %v493_v13   ;;  %498 = vperm.xlu0 %785, %v493_v13  }
0x109f   :  { %787 = vset.pattern.permute.xlu0 %v852_v5  ;;  %v651_v5 = vld [vmem:[%s1200_s5] ss:$0 sm:$0xff]  ;;  %s857_s5 = smov [#allocation2]  }
0x10a0   :  { %s639_s12 = sshll.u32 %s857_s5, 4  ;;  %s640_s12 = int_to_ptr.vmem [resolvable:$true] %s639_s12 }
0x10a1   :  { %s824_s7 = scalar_lea.vmem %s640_s12, 32  ;;  %p829_p1 = scmp.lt.s32.totalorder %s640_s12, %s640_s12 }
0x10a2   :  { %p825_p0 = scmp.ne.s32.totalorder %s640_s12, %s824_s7  ;;  %p830_p2 = scmp.lt.s32.totalorder %s824_s7, %s824_s7 }
0x10a4   :  { %p831_p3 = por %p830_p2, %p829_p1 }
0x10a6   :  { %p832_p4 = pnand %p831_p3, %p825_p0 }
0x111a   :  { %v515_v6 = vpop.permute.xlu1 %514  ;;  %v499_v22 = vpop.permute.xlu0 %498 }
0x111b   :  { %v505_v23 = vmul.f32 %v504_v3, %v499_v22  ;;  %v521_v24 = vmul.f32 %v520_v21, %v515_v6 }
0x111d   :  { %v512_v25 = vadd.f32 %v651_v5, %v505_v23 }
0x111f   :  { %v522_v26 = vadd.f32 %v521_v24, %v512_v25 }
0x1121   :  { %v523_v28 = vmax.f32 %v522_v26, 0.0 }
0x1123   :  { %v548_v29 = vrot.slane %v523_v28, 6 }
0x1125   :  { %703 = vmatmul.mubr.f32.vlgmr.msra.gmra.mrb[0].mxu1 %v548_v29 }
0x11f8   :  { %v616_v30 = vpop.f32.mrb[0].mxu1 }
0x11f9   :  { %v617_v43 = vadd.f32 %v652_v44, %v616_v30  ;;  %v704_v46 = vpop.f32.mrb[1].mxu1 }
0x11fb   :  { %v621_v31 = vsel %vm620_vm8, %v617_v43, -inf }
0x11fc   :  { %622 = vmax.xlane.f32.xlu0 %v621_v31 }
0x1289   :  { %v623_v32 = vpop.xlane.xlu0 %622 }
0x128a   :  { %v624_v33 = vsub.f32 %v617_v43, %v623_v32 }
0x128c   :  { %v625_v34 = vmul.f32 1.442695, %v624_v33 }
0x128e   :  { %820 = vpow2.f32 %v625_v34 }
0x1298   :  { %v821_v35 = vpop.eup %820 }
0x1299   :  { %v627_v36 = vsel %vm620_vm8, %v821_v35, 0.0 }
0x129a   :  { %628 = vadd.xlane.f32.xlu1 %v627_v36 }
0x1327   :  { %v629_v37 = vpop.xlane.xlu1 %628 }
0x1328   :  { %822 = vrcp.f32 %v629_v37 }
0x1332   :  { %v823_v49 = vpop.eup %822 }
0x1333   :  { %v631_v38 = vmul.f32 %v823_v49, %v821_v35 }
0x1335   :  { %632 = vst.msk [vmem:[#allocation2] sm:$0x3] %vm620_vm8, %v631_v38 }
0x1336   :  { %835 = shalt.err (!%p832_p4)
}
0x1337   :  { %s836_s15 = scalar_lea.hbm %s1203_s8, 32 }
0x1338   :  { %p837_p5 = scmp.ne.s32.totalorder %s1203_s8, %s836_s15  ;;  %p840_p6 = scmp.lt.u32.totalorder %s836_s15, %s1203_s8 }
0x133a   :  { %p842_p7 = pnand %p840_p6, %p837_p5 }
0x133c   :  { %845 = shalt.err (!%p842_p7)
}
0x133d   :  { %642 = dma.vmem_to_hbm [thread:$0]  %s640_s12, 32, %s1203_s8, [#allocation3]  }
0x133e   :  { %846 = dma.done.wait [#allocation3], 32  }
0x133f   :  { %847 = vsyncadd [#allocation3], 4294967264 }
0x1340   :  { %646 = vsyncpa [#allocation3], 1 }

</bundles_post_ra>
